<compile_context>
chip_gen: v7x
topology: tpu7x:2x2x1
jax: 0.10.0
libtpu: 0.0.40
codegen_flags: <defaults>
</compile_context>

<pallas_src>
import jax
import jax.numpy as jnp
from jax.experimental import pallas as pl
from jax.experimental.pallas import tpu as pltpu


def _mtl_kernel(packed_ref, out_ref):
    # packed_ref : SMEM (2,) f32  -> [ log_vars[0], entity_loss ]
    # out_ref    : SMEM (1,) f32
    lv0 = packed_ref[0]
    ent = packed_ref[1]
    out_ref[0] = jnp.exp(-lv0) * ent + lv0


def _mtl_pallas_forward(log_vars, entity_loss):
    lv0 = jnp.asarray(log_vars, jnp.float32).reshape(-1)[0]
    ent = jnp.asarray(entity_loss, jnp.float32).reshape(())
    packed = jnp.stack([lv0, ent])  # one operand, one host->SMEM staging buffer

    out = pl.pallas_call(
        _mtl_kernel,
        out_shape=jax.ShapeDtypeStruct((1,), jnp.float32),
        in_specs=[pl.BlockSpec(memory_space=pltpu.MemorySpace.SMEM)],
        out_specs=pl.BlockSpec(memory_space=pltpu.MemorySpace.SMEM),
        cost_estimate=pl.CostEstimate(flops=3, transcendentals=1, bytes_accessed=12),
    )(packed)
    return out[0]  # scalar, matching PyTorch's scalar loss


@jax.custom_vjp
def multi_task_loss(log_vars, entity_loss, relation_loss):
    """exp(-log_vars[0]) * entity_loss + log_vars[0]; relation_loss unused (as in the spec)."""
    del relation_loss
    return _mtl_pallas_forward(log_vars, entity_loss)


def _mtl_fwd(log_vars, entity_loss, relation_loss):
    loss = _mtl_pallas_forward(log_vars, entity_loss)
    return loss, (log_vars, entity_loss, relation_loss)


def _mtl_bwd(res, g):
    log_vars, entity_loss, relation_loss = res
    lv0 = jnp.asarray(log_vars, jnp.float32).reshape(-1)[0]
    ent = jnp.asarray(entity_loss, jnp.float32).reshape(())
    p0 = jnp.exp(-lv0)
    # d/d_log_vars[0] = 1 - exp(-lv0) * entity_loss ; other entries get 0.
    d_lv0 = (g * (1.0 - p0 * ent)).astype(log_vars.dtype)
    d_log_vars = jnp.zeros_like(log_vars).at[0].set(d_lv0)
    # d/d_entity_loss = exp(-lv0)
    d_entity = jnp.broadcast_to(g * p0, jnp.shape(entity_loss)).astype(
        jnp.asarray(entity_loss).dtype
    )
    # relation_loss never enters the forward -> zero cotangent.
    d_relation = jnp.zeros_like(relation_loss)
    return d_log_vars, d_entity, d_relation


multi_task_loss.defvjp(_mtl_fwd, _mtl_bwd)


if __name__ == "__main__":
    task_num = 2

    key = jax.random.PRNGKey(0)
    k1, k2, k3 = jax.random.split(key, 3)
    # Synthetic scalar task losses (e.g. already-reduced cross-entropy values).
    entity_loss = jnp.abs(jax.random.normal(k1, (), jnp.float32)) + 0.1
    relation_loss = jnp.abs(jax.random.normal(k2, (), jnp.float32)) + 0.1

    def ref_fn(log_vars, ent, rel):
        return jnp.exp(-log_vars[0]) * ent + log_vars[0]

    # Case 1: PyTorch's deterministic parameter init (log_vars = zeros(task_num)).
    log_vars_init = jnp.zeros((task_num,), jnp.float32)
    loss0 = jax.block_until_ready(multi_task_loss(log_vars_init, entity_loss, relation_loss))
    ref0 = ref_fn(log_vars_init, entity_loss, relation_loss)
    assert jnp.allclose(loss0, ref0, rtol=1e-6, atol=1e-6), (loss0, ref0)

    # Case 2: non-trivial log_vars (exercises the exp / weighting path).
    log_vars_trained = 0.5 * jax.random.normal(k3, (task_num,), jnp.float32)
    loss1 = jax.block_until_ready(multi_task_loss(log_vars_trained, entity_loss, relation_loss))
    ref1 = ref_fn(log_vars_trained, entity_loss, relation_loss)
    assert jnp.allclose(loss1, ref1, rtol=1e-6, atol=1e-6), (loss1, ref1)

    # Case 3: gradients (log_vars is a learnable parameter in the PyTorch module).
    g_kernel = jax.grad(multi_task_loss, argnums=(0, 1, 2))(
        log_vars_trained, entity_loss, relation_loss
    )
    g_ref = jax.grad(ref_fn, argnums=(0, 1, 2))(log_vars_trained, entity_loss, relation_loss)
    g_kernel = jax.block_until_ready(g_kernel)
    for gk, gr in zip(g_kernel, g_ref):
        assert jnp.allclose(gk, gr, rtol=1e-6, atol=1e-6), (gk, gr)

    print("KERNEL_OK")
</pallas_src>

<mosaic_0001>
module attributes {stable_mosaic.version = 11 : i64} {
  func.func @_mtl_kernel(%arg0: memref<2xf32, #tpu.memory_space<smem>>, %arg1: memref<1xf32, #tpu.memory_space<smem>>) attributes {dimension_semantics = [], scalar_prefetch = 0 : i64, scratch_operands = 0 : i64, tpu.core_type = #tpu.core_type<tc>} {
    %c0 = arith.constant 0 : index
    %0 = memref.load %arg0[%c0] : memref<2xf32, #tpu.memory_space<smem>>
    %c1 = arith.constant 1 : index
    %1 = memref.load %arg0[%c1] : memref<2xf32, #tpu.memory_space<smem>>
    %cst = arith.constant 0.000000e+00 : f32
    %2 = arith.subf %cst, %0 : f32
    %3 = math.exp %2 : f32
    %4 = arith.mulf %3, %1 : f32
    %5 = arith.addf %4, %0 : f32
    %c0_0 = arith.constant 0 : index
    %6 = memref.load %arg1[%c0_0] : memref<1xf32, #tpu.memory_space<smem>>
    memref.store %5, %arg1[%c0_0] : memref<1xf32, #tpu.memory_space<smem>>
    return
  }
}

</mosaic_0001>

<bundles_post_ra>
// kernel: tpu_custom_call.1
= control target key start
LH: loop header
LB: loop body
LE: loop exit
PB: predicated region body
PF: predicated region fallthrough
CT: control target
= control target key end

     0   :  { %6 = vsyncpa [#allocation3], 0  ;;  %s112_s0 = inlined_call_operand.hbm [shape: f32[2], index: 0, kind: input, shape index: {}]   ;;  %s113_s1 = inlined_call_operand.hbm [shape: f32[1], index: 1, kind: output, shape index: {}]  }
   0x1   :  { %7 = vsyncpa [#allocation4], 0  ;;  %s52_s8 = scalar_lea.hbm %s112_s0, 16 }
   0x2   :  { %p53_p0 = scmp.ne.s32.totalorder %s112_s0, %s52_s8  ;;  %p56_p1 = scmp.lt.u32.totalorder %s52_s8, %s112_s0 }
   0x4   :  { %p58_p2 = pnand %p56_p1, %p53_p0 }
   0x6   :  { %61 = shalt.err (!%p58_p2)
}
   0x7   :  { %s76_s13 = smov [#allocation2]  }
   0x8   :  { %15 = dma.hbm_to_smem %s112_s0, 16, %s76_s13, [#allocation3]  }
   0x9   :  { %72 = dma.done.wait [#allocation3], 16  }
   0xa   :  { %73 = vsyncadd [#allocation3], 4294967280 }
   0xb   :  { %19 = sfence }
   0xc   :  { %s20_s16 = sld [smem:[#allocation2]]  ;;  %s45_s18 = sld [smem:[#allocation2 + $0x1]] }
   0xd   :  { %s62_s24 = scalar_lea.hbm %s113_s1, 16 }
   0xe   :  { %p63_p3 = scmp.ne.s32.totalorder %s113_s1, %s62_s24  ;;  %p66_p4 = scmp.lt.u32.totalorder %s62_s24, %s113_s1 }
  0x10   :  { %p68_p5 = pnand %p66_p4, %p63_p3 }
  0x12   :  { %s22_s17 = ssub.f32 0.0, %s20_s16 }
  0x14   :  { %v23_v0 = vstv %s22_s17 }
  0x15   :  { %v24_v1 = vmul.f32 1.442695, %v23_v0 }
  0x17   :  { %50 = vpow2.f32 %v24_v1 }
  0x21   :  { %v51_v2 = vpop.eup %50 }
  0x22   :  { %46 = vpush %v51_v2 }
  0x53   :  { %s47_s19 = spop %46 }
  0x54   :  { %s27_s20 = smul.f32 %s47_s19, %s45_s18 }
  0x56   :  { %s28_s21 = sadd.f32 %s27_s20, %s20_s16 }
  0x58   :  { %30 = sst [smem:[#allocation5]] %s28_s21 }
  0x59   :  { %71 = shalt.err (!%p68_p5)
}
  0x5a   :  { %s77_s28 = smov [#allocation5]  }
  0x5b   :  { %38 = dma.smem_to_hbm %s77_s28, 16, %s113_s1, [#allocation4]  }
  0x5c   :  { %74 = dma.done.wait [#allocation4], 16  }
  0x5d   :  { %75 = vsyncadd [#allocation4], 4294967280 }
  0x5e   :  { %42 = sfence }
  0x5f   :  { %43 = vsyncpa [#allocation3], 1 }
  0x60   :  { %44 = vsyncpa [#allocation4], 1 }

</bundles_post_ra>
